<compile_context>
chip_gen: v6e
topology: v6e:2x2x1
jax: 0.10.0
libtpu: 0.0.40
codegen_flags: <defaults>
</compile_context>

<pallas_src>
import math

import jax
import jax.numpy as jnp
from jax.experimental import pallas as pl
from jax.experimental.pallas import tpu as pltpu


def _round_up(n: int, m: int) -> int:
    return ((n + m - 1) // m) * m


def _cdiv(a: int, b: int) -> int:
    return (a + b - 1) // b


def _choose_tiles(B: int, *, cap: int = 32768, lane: int = 128) -> tuple[int, int]:
    """Pick (bm, num_tiles): tile count first (bounds padding), lane-aligned bm."""
    num_tiles = max(1, _cdiv(B, cap))
    # Keep >= 2 (even) grid steps once the batch is non-trivial so the
    # "parallel" batch axis can be split across v7x's two TensorCores.
    if B >= 2 * lane and num_tiles < 2:
        num_tiles = 2
    if num_tiles > 1 and num_tiles % 2:
        num_tiles += 1
    bm = _round_up(_cdiv(B, num_tiles), lane)
    return bm, num_tiles


# ---------------------------------------------------------------------------
# Pallas kernel: fused (one-hot + concat + Linear -> ReLU -> Linear[mu half]),
# feature-major (batch on the lane axis).
# ---------------------------------------------------------------------------
def _outcome_mu_kernel(xT_ref, t_ref, w1xT_ref, bt_ref, w2T_ref, b2T_ref, muT_ref):
    # xT_ref : (d_x, bm)  bf16/f32     t_ref : (1, bm) int32 (values in [0, k))
    # w1xT_ref: (H, d_x)  bf16/f32     bt_ref: (H, k) f32  == (b1 + W1_t)^T
    # w2T_ref : (d_y, H)  bf16/f32     b2T_ref: (d_y, 1) f32
    # muT_ref : (d_y, bm) f32
    xT = xT_ref[...]
    t = t_ref[...]

    # h1^T = W1_x^T @ x^T on the MXU with f32 accumulation.
    h = jnp.dot(w1xT_ref[...], xT, preferred_element_type=jnp.float32)   # (H, bm)

    # Folded per-column bias: b1 + W1_t[t], selected with a (k-1)-deep chain.
    k = bt_ref.shape[1]
    bias = bt_ref[:, k - 1:k]                                            # (H, 1)
    for j in range(k - 1):          # unrolled at trace time (k == 2 -> one select)
        bias = jnp.where(t == j, bt_ref[:, j:j + 1], bias)
    h = jnp.maximum(h + bias, 0.0)                                       # ReLU

    # mu^T = W2_mu^T @ h1^T + b2 : lane-dense (d_y, bm) output stores.
    muT_ref[...] = (
        jnp.dot(w2T_ref[...], h.astype(w2T_ref.dtype),
                preferred_element_type=jnp.float32)
        + b2T_ref[...]
    )


def outcome_mu_pallas(x, t, w1x_T, bias_table_T, w2mu_T, b2mu_T, *,
                      tile_cap: int = 32768, mxu_dtype=jnp.bfloat16):
    """mu = outcome-MLP(x, t).  x: (B, d_x), t: (B,) int  ->  (B, d_y) f32."""
    B, d_x = x.shape
    H = w1x_T.shape[0]
    k = bias_table_T.shape[1]
    d_y = w2mu_T.shape[0]

    bm, num_tiles = _choose_tiles(B, cap=tile_cap)
    B_pad = bm * num_tiles

    # Feature-major views (batch on the last / lane axis). Cast MXU operands
    # to mxu_dtype before transposing/padding to halve the plumbing traffic.
    xT = x.astype(mxu_dtype).T                            # (d_x, B)
    tT = t.astype(jnp.int32).reshape(1, B)                # (1, B)
    if B_pad != B:
        xT = jnp.pad(xT, ((0, 0), (0, B_pad - B)))
        tT = jnp.pad(tT, ((0, 0), (0, B_pad - B)))        # pad with t = 0 (valid class)

    # NOTE: t stays a separate tiny (1, bm) stream; folding it into x only
    # mattered when the grid-step count was high.
    muT = pl.pallas_call(
        _outcome_mu_kernel,
        out_shape=jax.ShapeDtypeStruct((d_y, B_pad), jnp.float32),
        grid=(num_tiles,),
        in_specs=[
            pl.BlockSpec((d_x, bm), lambda i: (0, i)),     # x^T : streamed over batch
            pl.BlockSpec((1, bm), lambda i: (0, i)),       # t   : streamed over batch
            pl.BlockSpec((H, d_x), lambda i: (0, 0)),      # W1_x^T: VMEM-resident
            pl.BlockSpec((H, k), lambda i: (0, 0)),        # (b1 + W1_t)^T
            pl.BlockSpec((d_y, H), lambda i: (0, 0)),      # W2[:, :d_y]^T
            pl.BlockSpec((d_y, 1), lambda i: (0, 0)),      # b2[:, :d_y]^T
        ],
        out_specs=pl.BlockSpec((d_y, bm), lambda i: (0, i)),
        compiler_params=pltpu.CompilerParams(
            dimension_semantics=("parallel",),             # split batch across TCs (v7x)
        ),
    )(xT, tT, w1x_T.astype(mxu_dtype), bias_table_T,
      w2mu_T.astype(mxu_dtype), b2mu_T)

    return muT[:, :B].T                                    # back to (B, d_y)


# ---------------------------------------------------------------------------
# Module wrapper (parameter setup + glue in plain JAX)
# ---------------------------------------------------------------------------
class GFlowNetTreatmentPallas:
    """JAX/Pallas port of GFlowNetTreatment.forward (mean of p(y|x,t))."""

    def __init__(self, d_x: int, d_y: int, k: int = 2, hidden: int = 128,
                 seed: int = 0, use_bf16_mxu: bool = True):
        self.d_x, self.d_y, self.k, self.hidden = d_x, d_y, k, hidden
        self.mxu_dtype = jnp.bfloat16 if use_bf16_mxu else jnp.float32
        d_in = d_x + k
        key = jax.random.PRNGKey(seed)
        k1, k2, k3, k4 = jax.random.split(key, 4)
        # nn.Linear-style init: U(-1/sqrt(fan_in), +1/sqrt(fan_in)).
        # Weights are stored (in, out); trained PyTorch weights (out, in)
        # would need a transpose before loading.
        lim1 = 1.0 / math.sqrt(d_in)
        lim2 = 1.0 / math.sqrt(hidden)
        self.w1 = jax.random.uniform(k1, (d_in, hidden), jnp.float32, -lim1, lim1)
        self.b1 = jax.random.uniform(k2, (1, hidden), jnp.float32, -lim1, lim1)
        self.w2 = jax.random.uniform(k3, (hidden, 2 * d_y), jnp.float32, -lim2, lim2)
        self.b2 = jax.random.uniform(k4, (1, 2 * d_y), jnp.float32, -lim2, lim2)
        # Kernel-friendly derived views (computed once, outside the kernel):
        self.w1x_T = self.w1[:d_x, :].T                     # (H, d_x)
        self.bias_table_T = (self.b1 + self.w1[d_x:, :]).T  # (H, k)  b1 + W1_t rows
        self.w2mu_T = self.w2[:, :d_y].T                    # (d_y, H) mu half of W2
        self.b2mu_T = self.b2[:, :d_y].T                    # (d_y, 1)

    def forward(self, x: jnp.ndarray, t: jnp.ndarray) -> jnp.ndarray:
        # x: (B, d_x) float32, t: (B,) int  ->  mu: (B, d_y) float32
        return outcome_mu_pallas(
            x, t, self.w1x_T, self.bias_table_T, self.w2mu_T, self.b2mu_T,
            mxu_dtype=self.mxu_dtype,
        )

    def forward_ref(self, x: jnp.ndarray, t: jnp.ndarray) -> jnp.ndarray:
        # Pure-JAX f32 reference (mirrors the PyTorch graph) for correctness checks.
        t_onehot = jax.nn.one_hot(t.astype(jnp.int32), self.k, dtype=jnp.float32)
        z = jnp.concatenate([x.astype(jnp.float32), t_onehot], axis=-1)
        h1 = jnp.maximum(
            jnp.dot(z, self.w1, precision=jax.lax.Precision.HIGHEST) + self.b1, 0.0)
        h2 = jnp.dot(h1, self.w2, precision=jax.lax.Precision.HIGHEST) + self.b2
        return h2[:, : self.d_y]

    # TODO(synk): loss() uses torch.multinomial sampling + boolean-mask mean
    # (data-dependent shapes); only the deterministic forward pass is kernelized.


# ---------------------------------------------------------------------------
if __name__ == "__main__":
    d_x, d_y, k = 16, 4, 2
    key = jax.random.PRNGKey(0)

    # Dual-mode test: strict f32 parity, and the (default) bf16-MXU fast path
    # with a correspondingly looser tolerance.
    for use_bf16, tol in ((False, 1e-3), (True, 5e-2)):
        model = GFlowNetTreatmentPallas(d_x, d_y, k=k, hidden=128, seed=0,
                                        use_bf16_mxu=use_bf16)
        # multiple-of-128 padding path, ragged batch, and the >=2-tile split path
        for batch in (8, 37, 300):
            key, kx, kt = jax.random.split(key, 3)
            x = jax.random.normal(kx, (batch, d_x), dtype=jnp.float32)
            t = jax.random.randint(kt, (batch,), 0, k, dtype=jnp.int32)

            mu = model.forward(x, t)
            jax.block_until_ready(mu)

            mu_ref = model.forward_ref(x, t)
            assert mu.shape == (batch, d_y)
            assert jnp.allclose(mu, mu_ref, atol=tol, rtol=tol), (use_bf16, batch)

    print("KERNEL_OK")
</pallas_src>

<mosaic_0001>
module attributes {stable_mosaic.version = 11 : i64} {
  func.func @_outcome_mu_kernel(%arg0: i32, %arg1: memref<16x128xf32, #tpu.memory_space<vmem>>, %arg2: memref<1x128xi32, #tpu.memory_space<vmem>>, %arg3: memref<128x16xf32, #tpu.memory_space<vmem>>, %arg4: memref<128x2xf32, #tpu.memory_space<vmem>>, %arg5: memref<4x128xf32, #tpu.memory_space<vmem>>, %arg6: memref<4x1xf32, #tpu.memory_space<vmem>>, %arg7: memref<4x128xf32, #tpu.memory_space<vmem>>) attributes {dimension_semantics = [#tpu.dimension_semantics<parallel>], iteration_bounds = array<i64: 1>, scalar_prefetch = 0 : i64, scratch_operands = 0 : i64, tpu.core_type = #tpu.core_type<tc>, window_params = [{transform_indices = @transform_0, window_bounds = array<i64: 16, 128>}, {transform_indices = @transform_1, window_bounds = array<i64: 1, 128>}, {pipeline_mode = #tpu.pipeline_mode<synchronous>, transform_indices = @transform_2, window_bounds = array<i64: 128, 16>}, {pipeline_mode = #tpu.pipeline_mode<synchronous>, transform_indices = @transform_3, window_bounds = array<i64: 128, 2>}, {pipeline_mode = #tpu.pipeline_mode<synchronous>, transform_indices = @transform_4, window_bounds = array<i64: 4, 128>}, {pipeline_mode = #tpu.pipeline_mode<synchronous>, transform_indices = @transform_5, window_bounds = array<i64: 4, 1>}, {transform_indices = @transform_6, window_bounds = array<i64: 4, 128>}]} {
    %c0 = arith.constant 0 : index
    %c0_0 = arith.constant 0 : index
    %0 = vector.load %arg1[%c0, %c0_0] : memref<16x128xf32, #tpu.memory_space<vmem>>, vector<16x128xf32>
    %c0_1 = arith.constant 0 : index
    %c0_2 = arith.constant 0 : index
    %1 = vector.load %arg2[%c0_1, %c0_2] : memref<1x128xi32, #tpu.memory_space<vmem>>, vector<1x128xi32>
    %c0_3 = arith.constant 0 : index
    %c0_4 = arith.constant 0 : index
    %2 = vector.load %arg3[%c0_3, %c0_4] : memref<128x16xf32, #tpu.memory_space<vmem>>, vector<128x16xf32>
    %cst = arith.constant dense<0.000000e+00> : vector<128x128xf32>
    %3 = tpu.matmul %2, %0, %cst {dimension_numbers = #tpu.dot_dimension_numbers<[1], [0], [0], [1], [0, 0, 1, 1], [], []>} : vector<128x16xf32>, vector<16x128xf32>, vector<128x128xf32> -> vector<128x128xf32>
    %c0_5 = arith.constant 0 : index
    %c1 = arith.constant 1 : index
    %4 = vector.load %arg4[%c0_5, %c1] : memref<128x2xf32, #tpu.memory_space<vmem>>, vector<128x1xf32>
    %c0_i32 = arith.constant 0 : i32
    %5 = vector.broadcast %c0_i32 : i32 to vector<1x128xi32>
    %6 = arith.cmpi eq, %1, %5 : vector<1x128xi32>
    %c0_6 = arith.constant 0 : index
    %c0_7 = arith.constant 0 : index
    %7 = vector.load %arg4[%c0_6, %c0_7] : memref<128x2xf32, #tpu.memory_space<vmem>>, vector<128x1xf32>
    %8 = vector.shape_cast %6 : vector<1x128xi1> to vector<1x128xi1>
    %9 = vector.broadcast %8 : vector<1x128xi1> to vector<128x128xi1>
    %10 = vector.shape_cast %7 : vector<128x1xf32> to vector<128x1xf32>
    %11 = vector.broadcast %10 : vector<128x1xf32> to vector<128x128xf32>
    %12 = vector.shape_cast %4 : vector<128x1xf32> to vector<128x1xf32>
    %13 = vector.broadcast %12 : vector<128x1xf32> to vector<128x128xf32>
    %14 = arith.select %9, %11, %13 : vector<128x128xi1>, vector<128x128xf32>
    %15 = arith.addf %3, %14 : vector<128x128xf32>
    %cst_8 = arith.constant 0.000000e+00 : f32
    %16 = vector.broadcast %cst_8 : f32 to vector<128x128xf32>
    %17 = arith.maximumf %15, %16 : vector<128x128xf32>
    %c0_9 = arith.constant 0 : index
    %c0_10 = arith.constant 0 : index
    %18 = vector.load %arg5[%c0_9, %c0_10] : memref<4x128xf32, #tpu.memory_space<vmem>>, vector<4x128xf32>
    %cst_11 = arith.constant dense<0.000000e+00> : vector<4x128xf32>
    %19 = tpu.matmul %18, %17, %cst_11 {dimension_numbers = #tpu.dot_dimension_numbers<[1], [0], [0], [1], [0, 0, 1, 1], [], []>} : vector<4x128xf32>, vector<128x128xf32>, vector<4x128xf32> -> vector<4x128xf32>
    %c0_12 = arith.constant 0 : index
    %c0_13 = arith.constant 0 : index
    %20 = vector.load %arg6[%c0_12, %c0_13] : memref<4x1xf32, #tpu.memory_space<vmem>>, vector<4x1xf32>
    %21 = vector.broadcast %20 : vector<4x1xf32> to vector<4x128xf32>
    %22 = arith.addf %19, %21 : vector<4x128xf32>
    %c0_14 = arith.constant 0 : index
    %c0_15 = arith.constant 0 : index
    %23 = vector.load %arg7[%c0_14, %c0_15] : memref<4x128xf32, #tpu.memory_space<vmem>>, vector<4x128xf32>
    tpu.vector_store %arg7[%c0_14, %c0_15], %22 {strides = array<i32>} : memref<4x128xf32, #tpu.memory_space<vmem>>, vector<4x128xf32>,
    return
  }
  func.func @transform_0(%arg0: i32) -> (i32, i32) {
    %c0_i32 = arith.constant 0 : i32
    %c0_i32_0 = arith.constant 0 : i32
    return %c0_i32, %arg0 : i32, i32
  }
  func.func @transform_1(%arg0: i32) -> (i32, i32) {
    %c0_i32 = arith.constant 0 : i32
    %c0_i32_0 = arith.constant 0 : i32
    return %c0_i32, %arg0 : i32, i32
  }
  func.func @transform_2(%arg0: i32) -> (i32, i32) {
    %c0_i32 = arith.constant 0 : i32
    %c0_i32_0 = arith.constant 0 : i32
    %c0_i32_1 = arith.constant 0 : i32
    return %c0_i32, %c0_i32_0 : i32, i32
  }
  func.func @transform_3(%arg0: i32) -> (i32, i32) {
    %c0_i32 = arith.constant 0 : i32
    %c0_i32_0 = arith.constant 0 : i32
    %c0_i32_1 = arith.constant 0 : i32
    return %c0_i32, %c0_i32_0 : i32, i32
  }
  func.func @transform_4(%arg0: i32) -> (i32, i32) {
    %c0_i32 = arith.constant 0 : i32
    %c0_i32_0 = arith.constant 0 : i32
    %c0_i32_1 = arith.constant 0 : i32
    return %c0_i32, %c0_i32_0 : i32, i32
  }
  func.func @transform_5(%arg0: i32) -> (i32, i32) {
    %c0_i32 = arith.constant 0 : i32
    %c0_i32_0 = arith.constant 0 : i32
    %c0_i32_1 = arith.constant 0 : i32
    return %c0_i32, %c0_i32_0 : i32, i32
  }
  func.func @transform_6(%arg0: i32) -> (i32, i32) {
    %c0_i32 = arith.constant 0 : i32
    %c0_i32_0 = arith.constant 0 : i32
    return %c0_i32, %arg0 : i32, i32
  }
}

</mosaic_0001>

<bundles_post_ra>
// kernel: tpu_custom_call.1
= control target key start
LH: loop header
LB: loop body
LE: loop exit
PB: predicated region body
PF: predicated region fallthrough
CT: control target
= control target key end

     0   :  { %vm226_vm0 = vcmask 130048   ;;  %v675_v4 = vmov 0   ;;  %v676_v10 = vmov 1   ;;  %s926_s0 = inlined_call_operand.vmem [shape: f32[16,128], index: 0, kind: input, shape index: {}]   ;;  %s927_s1 = inlined_call_operand.vmem [shape: s32[1,128], index: 1, kind: input, shape index: {}]   ;;  %s928_s2 = inlined_call_operand.vmem [shape: f32[128,16], index: 2, kind: input, shape index: {}]   ;;  %s929_s3 = inlined_call_operand.vmem [shape: f32[128,2], index: 3, kind: input, shape index: {}]   ;;  %s930_s4 = inlined_call_operand.vmem [shape: f32[4,128], index: 4, kind: input, shape index: {}]   ;;  %s931_s5 = inlined_call_operand.vmem [shape: f32[4,1], index: 5, kind: input, shape index: {}]   ;;  %s932_s6 = inlined_call_operand.hbm [shape: f32[4,128], index: 6, kind: output, shape index: {}]  }
   0x1   :  { %v25_v0 = vld [vmem:[%s926_s0 + $0x8] sm:$0xff]  ;;  %v24_v1 = vld [vmem:[%s926_s0] sm:$0xff]  ;;  %649 = vset.pattern.permute.xlu1 %v675_v4  ;;  %v57_v5 = vld [vmem:[%s929_s3 + $0x70] sm:$0xff]  ;;  %647 = vset.pattern.permute.xlu0 %v675_v4 }
   0x2   :  { %v27_v2 = vld [vmem:[%s928_s2] sm:$0xff]  ;;  %579 = vmatprep.subr.mxu0 %v25_v0  ;;  %v28_v3 = vld [vmem:[%s928_s2 + $0x8] sm:$0xff]  ;;  %v29_v6 = vld [vmem:[%s928_s2 + $0x10] sm:$0xff]  ;;  %138 = vperm.xlu1 %649, %v57_v5  }
   0x3   :  { %583 = vmatprep.mubr.msk.f32.mxu0 %vm226_vm0, %v27_v2  ;;  %580 = vmatpush3.msra.mxu0 %v25_v0  ;;  %v58_v7 = vld [vmem:[%s929_s3 + $0x78] sm:$0xff]  ;;  %v31_v9 = vld [vmem:[%s928_s2 + $0x20] sm:$0xff]  ;;  %v32_v11 = vld [vmem:[%s928_s2 + $0x28] sm:$0xff] }
   0x4   :  { %581 = vmatprep.subr.mxu0 %v24_v1  ;;  %143 = vperm.xlu0 %647, %v58_v7   ;;  %v30_v8 = vld [vmem:[%s928_s2 + $0x18] sm:$0xff]  ;;  %v33_v12 = vld [vmem:[%s928_s2 + $0x30] sm:$0xff]  ;;  %v56_v13 = vld [vmem:[%s929_s3 + $0x68] sm:$0xff] }
   0x5   :  { %582 = vmatpush3.msra.mxu0 %v24_v1 }
   0x6   :  { %584 = vmatmul.mubr.msk.f32.vlgmr.msra.gmra.mxu0 %vm226_vm0, %v28_v3  ;;  %650 = vset.pattern.permute.xlu1 %v676_v10 }
   0x7   :  { %586 = vmatprep.mubr.msk.f32.mxu0 %vm226_vm0, %v29_v6  ;;  %203 = vperm.xlu1 %650, %v57_v5  }
   0x8   :  { %648 = vset.pattern.permute.xlu0 %v676_v10 }
   0x9   :  { %207 = vperm.xlu0 %648, %v58_v7  }
   0xa   :  { %587 = vmatmul.mubr.msk.f32.gmra.mxu0 %vm226_vm0, %v30_v8 }
   0xb   :  { %589 = vmatprep.mubr.msk.f32.mxu0 %vm226_vm0, %v31_v9 }
   0xc   :  { %11 = vsyncpa [#allocation3], 0  ;;  %v34_v14 = vld [vmem:[%s928_s2 + $0x38] sm:$0xff]  ;;  %651 = vset.pattern.permute.xlu1 %v675_v4  ;;  %v35_v15 = vld [vmem:[%s928_s2 + $0x40] sm:$0xff]  ;;  %v677_v37 = vmov 0.0   ;;  %vm678_vm1 = vmmov 0   ;;  %v61_v59 = vlaneseq }
   0xd   :  { %199 = vperm.xlu0 %648, %v56_v13   ;;  %133 = vperm.xlu1 %651, %v56_v13   ;;  %v55_v16 = vld [vmem:[%s929_s3 + $0x60] sm:$0xff]  ;;  %v36_v17 = vld [vmem:[%s928_s2 + $0x48] sm:$0xff]  ;;  %v37_v18 = vld [vmem:[%s928_s2 + $0x50] sm:$0xff]  ;;  %s679_s16 = smov [#allocation2]  }
   0xe   :  { %590 = vmatmul.mubr.msk.f32.gmra.mxu0 %vm226_vm0, %v32_v11  ;;  %v54_v19 = vld [vmem:[%s929_s3 + $0x58] sm:$0xff]  ;;  %v39_v21 = vld [vmem:[%s928_s2 + $0x60] sm:$0xff]  ;;  %v53_v22 = vld [vmem:[%s929_s3 + $0x50] sm:$0xff]  ;;  %607 = vmatprep.subr.mxu1 %v677_v37  ;;  %v62_v1 = vshrl.u32 %v61_v59, 7  ;;  %s520_s17 = sshll.u32 %s679_s16, 4  ;;  %s521_s17 = int_to_ptr.vmem [resolvable:$true] %s520_s17 }
   0xf   :  { %592 = vmatprep.mubr.msk.f32.mxu0 %vm226_vm0, %v33_v12  ;;  %v38_v20 = vld [vmem:[%s928_s2 + $0x58] sm:$0xff]  ;;  %v40_v23 = vld [vmem:[%s928_s2 + $0x68] sm:$0xff]  ;;  %v41_v24 = vld [vmem:[%s928_s2 + $0x70] sm:$0xff]  ;;  %639 = vmatprep.mubr.msk.f32.mxu1 %vm678_vm1, %v677_v37  ;;  %s653_s18 = scalar_lea.vmem %s521_s17, 64  ;;  %p658_p1 = scmp.lt.s32.totalorder %s521_s17, %s521_s17 }
  0x10   :  { %v52_v25 = vld [vmem:[%s929_s3 + $0x48] sm:$0xff]  ;;  %v42_v26 = vld [vmem:[%s928_s2 + $0x78] sm:$0xff]  ;;  %v51_v27 = vld [vmem:[%s929_s3 + $0x40] sm:$0xff]  ;;  %v63_v7 = vsub.s32 0, %v62_v1  ;;  %p654_p0 = scmp.ne.s32.totalorder %s521_s17, %s653_s18  ;;  %p659_p2 = scmp.lt.s32.totalorder %s653_s18, %s653_s18 }
  0x11   :  { %195 = vperm.xlu0 %648, %v55_v16   ;;  %128 = vperm.xlu1 %651, %v55_v16   ;;  %v50_v28 = vld [vmem:[%s929_s3 + $0x38] sm:$0xff]  ;;  %v49_v29 = vld [vmem:[%s929_s3 + $0x30] sm:$0xff]  ;;  %v48_v30 = vld [vmem:[%s929_s3 + $0x28] sm:$0xff] }
  0x12   :  { %593 = vmatmul.mubr.msk.f32.gmra.mxu0 %vm226_vm0, %v34_v14  ;;  %v47_v31 = vld [vmem:[%s929_s3 + $0x20] sm:$0xff]  ;;  %v46_v32 = vld [vmem:[%s929_s3 + $0x18] sm:$0xff]  ;;  %v45_v33 = vld [vmem:[%s929_s3 + $0x10] sm:$0xff]  ;;  %p660_p3 = por %p659_p2, %p658_p1 }
  0x13   :  { %595 = vmatprep.mubr.msk.f32.mxu0 %vm226_vm0, %v35_v15  ;;  %v44_v34 = vld [vmem:[%s929_s3 + $0x8] sm:$0xff]  ;;  %v43_v35 = vld [vmem:[%s929_s3] sm:$0xff] }
  0x14   :  { %v437_v36 = vld [vmem:[%s931_s5] sm:$0xf]  ;;  %p661_p4 = pnand %p660_p3, %p654_p0 }
  0x15   :  { %191 = vperm.xlu0 %648, %v54_v19   ;;  %123 = vperm.xlu1 %651, %v54_v19   ;;  %v26_v63 = vld [vmem:[%s927_s1] sm:$0x1] }
  0x16   :  { %596 = vmatmul.mubr.msk.f32.gmra.mxu0 %vm226_vm0, %v36_v17  ;;  %vm59_vm2 = vcmp.eq.s32.totalorder %v26_v63, 0 }
  0x17   :  { %598 = vmatprep.mubr.msk.f32.mxu0 %vm226_vm0, %v37_v18  ;;  %v60_v8 = vsel %vm59_vm2, 1, %v675_v4 }
  0x18   :  { %v862_v11 = vrot.slane %v60_v8, %v63_v7 }
  0x19   :  { %187 = vperm.xlu0 %648, %v53_v22   ;;  %118 = vperm.xlu1 %651, %v53_v22  }
  0x1a   :  { %599 = vmatmul.mubr.msk.f32.gmra.mxu0 %vm226_vm0, %v38_v20  ;;  %vm65_vm3 = vcmp.eq.s32.totalorder %v862_v11, 1 }
  0x1b   :  { %601 = vmatprep.mubr.msk.f32.mxu0 %vm226_vm0, %v39_v21 }
  0x1d   :  { %183 = vperm.xlu0 %648, %v52_v25   ;;  %113 = vperm.xlu1 %651, %v52_v25  }
  0x1e   :  { %602 = vmatmul.mubr.msk.f32.gmra.mxu0 %vm226_vm0, %v40_v23 }
  0x1f   :  { %604 = vmatprep.mubr.msk.f32.mxu0 %vm226_vm0, %v41_v24 }
  0x21   :  { %179 = vperm.xlu0 %648, %v51_v27   ;;  %108 = vperm.xlu1 %651, %v51_v27  }
  0x22   :  { %605 = vmatmul.mubr.msk.f32.gmra.mxu0 %vm226_vm0, %v42_v26 }
  0x25   :  { %175 = vperm.xlu0 %648, %v50_v28   ;;  %103 = vperm.xlu1 %651, %v50_v28  }
  0x29   :  { %171 = vperm.xlu0 %648, %v49_v29   ;;  %98 = vperm.xlu1 %651, %v49_v29  }
  0x2d   :  { %167 = vperm.xlu0 %648, %v48_v30   ;;  %93 = vperm.xlu1 %651, %v48_v30  }
  0x31   :  { %163 = vperm.xlu0 %648, %v47_v31   ;;  %88 = vperm.xlu1 %651, %v47_v31  }
  0x35   :  { %159 = vperm.xlu0 %648, %v46_v32   ;;  %83 = vperm.xlu1 %651, %v46_v32  }
  0x39   :  { %155 = vperm.xlu0 %648, %v45_v33   ;;  %78 = vperm.xlu1 %651, %v45_v33  }
  0x3d   :  { %151 = vperm.xlu0 %648, %v44_v34   ;;  %73 = vperm.xlu1 %651, %v44_v34  }
  0x41   :  { %147 = vperm.xlu0 %648, %v43_v35   ;;  %68 = vperm.xlu1 %651, %v43_v35  }
  0x45   :  { %440 = vperm.xlu1 %651, %v437_v36   ;;  %652 = vset.pattern.permute.xlu0 %v675_v4 }
  0x7d   :  { %v139_v39 = vpop.permute.xlu1 %138 }
  0x7f   :  { %v144_v38 = vpop.permute.xlu0 %143 }
  0x82   :  { %v204_v41 = vpop.permute.xlu1 %203 }
  0x83   :  { %v224_v22 = vsel %vm65_vm3, %v139_v39, %v204_v41 }
  0x84   :  { %v208_v40 = vpop.permute.xlu0 %207 }
  0x85   :  { %v225_v19 = vsel %vm65_vm3, %v144_v38, %v208_v40 }
  0x88   :  { %v200_v42 = vpop.permute.xlu0 %199  ;;  %v134_v43 = vpop.permute.xlu1 %133 }
  0x89   :  { %v223_v4 = vsel %vm65_vm3, %v134_v43, %v200_v42 }
  0x8c   :  { %v196_v44 = vpop.permute.xlu0 %195  ;;  %v129_v45 = vpop.permute.xlu1 %128 }
  0x8d   :  { %v222_v27 = vsel %vm65_vm3, %v129_v45, %v196_v44 }
  0x90   :  { %v192_v46 = vpop.permute.xlu0 %191  ;;  %v124_v47 = vpop.permute.xlu1 %123 }
  0x91   :  { %v221_v32 = vsel %vm65_vm3, %v124_v47, %v192_v46 }
  0x94   :  { %v188_v48 = vpop.permute.xlu0 %187  ;;  %v119_v49 = vpop.permute.xlu1 %118 }
  0x95   :  { %v220_v35 = vsel %vm65_vm3, %v119_v49, %v188_v48 }
  0x98   :  { %v184_v50 = vpop.permute.xlu0 %183  ;;  %v114_v51 = vpop.permute.xlu1 %113 }
  0x99   :  { %v219_v39 = vsel %vm65_vm3, %v114_v51, %v184_v50 }
  0x9c   :  { %v846_v54 = vpop.permute.xlu0 %179  ;;  %v109_v55 = vpop.permute.xlu1 %108 }
  0x9d   :  { %v218_v44 = vsel %vm65_vm3, %v109_v55, %v846_v54 }
  0xa0   :  { %v176_v60 = vpop.permute.xlu0 %175  ;;  %v104_v61 = vpop.permute.xlu1 %103 }
  0xa1   :  { %v217_v47 = vsel %vm65_vm3, %v104_v61, %v176_v60 }
  0xa4   :  { %v172_v3 = vpop.permute.xlu0 %171  ;;  %v99_v5 = vpop.permute.xlu1 %98 }
  0xa5   :  { %v216_v50 = vsel %vm65_vm3, %v99_v5, %v172_v3 }
  0xa8   :  { %v168_v12 = vpop.permute.xlu0 %167  ;;  %v94_v13 = vpop.permute.xlu1 %93 }
  0xa9   :  { %v215_v63 = vsel %vm65_vm3, %v94_v13, %v168_v12 }
  0xac   :  { %v164_v17 = vpop.permute.xlu0 %163  ;;  %v89_v18 = vpop.permute.xlu1 %88 }
  0xb0   :  { %v160_v28 = vpop.permute.xlu0 %159  ;;  %v84_v29 = vpop.permute.xlu1 %83 }
  0xb4   :  { %v156_v40 = vpop.permute.xlu0 %155  ;;  %v79_v41 = vpop.permute.xlu1 %78 }
  0xb8   :  { %v152_v51 = vpop.permute.xlu0 %151  ;;  %v74_v54 = vpop.permute.xlu1 %73 }
  0xb9   :  { %v211_v8 = vsel %vm65_vm3, %v74_v54, %v152_v51 }
  0xbc   :  { %v148_v5 = vpop.permute.xlu0 %147 }
  0xc6   :  { %v842_v52 = vpop.f32.mrf.mxu0 }
  0xc8   :  { %v844_v53 = vpop.f32.mrf.mxu0 }
  0xca   :  { %v848_v56 = vpop.f32.mrf.mxu0 }
  0xcc   :  { %v850_v57 = vpop.f32.mrf.mxu0 }
  0xce   :  { %v852_v58 = vpop.f32.mrf.mxu0 }
  0xcf   :  { %v367_v60 = vadd.f32 %v852_v58, %v215_v63 }
  0xd0   :  { %v854_v62 = vpop.f32.mrf.mxu0 }
  0xd1   :  { %v425_v7 = vmax.f32 %v367_v60, 0.0 }
  0xd2   :  { %v594_v0 = vpop.f32.mrf.mxu0 }
  0xd3   :  { %v377_v48 = vadd.f32 %v594_v0, %v217_v47  ;;  %v214_v0 = vsel %vm65_vm3, %v89_v18, %v164_v17 }
  0xd4   :  { %v859_v2 = vpop.f32.mrf.mxu0  ;;  %v362_v1 = vadd.f32 %v854_v62, %v214_v0 }
  0xd5   :  { %v372_v55 = vadd.f32 %v859_v2, %v216_v50  ;;  %v427_v61 = vmax.f32 %v377_v48, 0.0  ;;  %v213_v2 = vsel %vm65_vm3, %v84_v29, %v160_v28 }
  0xd6   :  { %v597_v6 = vpop.f32.mrf.mxu0  ;;  %v357_v58 = vadd.f32 %v848_v56, %v213_v2  ;;  %v347_v56 = vadd.f32 %v842_v52, %v211_v8  ;;  %v436_v52 = vld [vmem:[%s930_s4] sm:$0xf] }
  0xd7   :  { %v387_v42 = vadd.f32 %v597_v6, %v219_v39  ;;  %v426_v3 = vmax.f32 %v372_v55, 0.0  ;;  %v69_v6 = vpop.permute.xlu1 %68 }
  0xd8   :  { %v381_v9 = vpop.f32.mrf.mxu0  ;;  %v210_v12 = vsel %vm65_vm3, %v69_v6, %v148_v5  ;;  %v423_v13 = vmax.f32 %v357_v58, 0.0 }
  0xd9   :  { %v382_v45 = vadd.f32 %v381_v9, %v218_v44  ;;  %v429_v49 = vmax.f32 %v387_v42, 0.0  ;;  %v212_v9 = vsel %vm65_vm3, %v79_v41, %v156_v40 }
  0xda   :  { %v600_v10 = vpop.f32.mrf.mxu0  ;;  %v352_v62 = vadd.f32 %v850_v57, %v212_v9  ;;  %v421_v57 = vmax.f32 %v347_v56, 0.0 }
  0xdb   :  { %v397_v33 = vadd.f32 %v600_v10, %v221_v32  ;;  %v428_v59 = vmax.f32 %v382_v45, 0.0  ;;  %v424_v10 = vmax.f32 %v362_v1, 0.0 }
  0xdc   :  { %v391_v14 = vpop.f32.mrf.mxu0 }
  0xdd   :  { %v392_v36 = vadd.f32 %v391_v14, %v220_v35  ;;  %v431_v43 = vmax.f32 %v397_v33, 0.0  ;;  %v342_v14 = vadd.f32 %v844_v53, %v210_v12  ;;  %v441_v53 = vpop.permute.xlu1 %440 }
  0xde   :  { %v603_v15 = vpop.f32.mrf.mxu0 }
  0xdf   :  { %v407_v24 = vadd.f32 %v603_v15, %v223_v4  ;;  %v430_v46 = vmax.f32 %v392_v36, 0.0  ;;  %v422_v15 = vmax.f32 %v352_v62, 0.0  ;;  %v420_v11 = vmax.f32 %v342_v14, 0.0 }
  0xe0   :  { %v401_v16 = vpop.f32.mrf.mxu0 }
  0xe1   :  { %v402_v30 = vadd.f32 %v401_v16, %v222_v27  ;;  %v433_v34 = vmax.f32 %v407_v24, 0.0 }
  0xe2   :  { %v606_v20 = vpop.f32.mrf.mxu0 }
  0xe3   :  { %v417_v21 = vadd.f32 %v606_v20, %v225_v19  ;;  %v432_v38 = vmax.f32 %v402_v30, 0.0 }
  0xe4   :  { %v411_v23 = vpop.f32.mrf.mxu0 }
  0xe5   :  { %v435_v25 = vmax.f32 %v417_v21, 0.0  ;;  %v412_v26 = vadd.f32 %v411_v23, %v224_v22 }
  0xe7   :  { %v434_v31 = vmax.f32 %v412_v26, 0.0  ;;  %608 = vmatpush3.msra.mxu1 %v435_v25 }
  0xe8   :  { %609 = vmatprep.subr.mxu1 %v677_v37 }
  0xe9   :  { %610 = vmatpush3.msra.mxu1 %v434_v31 }
  0xea   :  { %611 = vmatprep.subr.mxu1 %v677_v37 }
  0xeb   :  { %612 = vmatpush3.msra.mxu1 %v433_v34 }
  0xec   :  { %613 = vmatprep.subr.mxu1 %v677_v37 }
  0xed   :  { %614 = vmatpush3.msra.mxu1 %v432_v38 }
  0xee   :  { %615 = vmatprep.subr.mxu1 %v677_v37 }
  0xef   :  { %616 = vmatpush3.msra.mxu1 %v431_v43 }
  0xf0   :  { %617 = vmatprep.subr.mxu1 %v677_v37 }
  0xf1   :  { %618 = vmatpush3.msra.mxu1 %v430_v46 }
  0xf2   :  { %619 = vmatprep.subr.mxu1 %v677_v37 }
  0xf3   :  { %620 = vmatpush3.msra.mxu1 %v429_v49 }
  0xf4   :  { %621 = vmatprep.subr.mxu1 %v677_v37 }
  0xf5   :  { %622 = vmatpush3.msra.mxu1 %v428_v59 }
  0xf6   :  { %623 = vmatprep.subr.mxu1 %v677_v37 }
  0xf7   :  { %624 = vmatpush3.msra.mxu1 %v427_v61 }
  0xf8   :  { %625 = vmatprep.subr.mxu1 %v677_v37 }
  0xf9   :  { %626 = vmatpush3.msra.mxu1 %v426_v3 }
  0xfa   :  { %627 = vmatprep.subr.mxu1 %v677_v37 }
  0xfb   :  { %628 = vmatpush3.msra.mxu1 %v425_v7 }
  0xfc   :  { %629 = vmatprep.subr.mxu1 %v677_v37 }
  0xfd   :  { %630 = vmatpush3.msra.mxu1 %v424_v10 }
  0xfe   :  { %631 = vmatprep.subr.mxu1 %v677_v37 }
  0xff   :  { %632 = vmatpush3.msra.mxu1 %v423_v13 }
 0x100   :  { %633 = vmatprep.subr.mxu1 %v677_v37 }
 0x101   :  { %634 = vmatpush3.msra.mxu1 %v422_v15 }
 0x102   :  { %635 = vmatprep.subr.mxu1 %v677_v37 }
 0x103   :  { %636 = vmatpush3.msra.mxu1 %v421_v57 }
 0x104   :  { %637 = vmatprep.subr.mxu1 %v677_v37 }
 0x105   :  { %638 = vmatpush3.msra.mxu1 %v420_v11 }
 0x106   :  { %640 = vmatmul.mubr.f32.vlgmr.msra.gmra.mxu1 %v436_v52 }
 0x1c6   :  { %v509_v16 = vpop.f32.mrf.mxu1 }
 0x1c7   :  { %v510_v17 = vadd.f32 %v509_v16, %v441_v53 }
 0x1c8   :  { %v641_v18 = vpop.f32.mrf.mxu1 }
 0x1c9   :  { %513 = vst [vmem:[#allocation2] sm:$0xf] %v510_v17 }
 0x1ca   :  { %664 = shalt.err (!%p661_p4)
}
 0x1cb   :  { %523 = dma.vmem_to_hbm [thread:$0]  %s521_s17, 64, %s932_s6, [#allocation3]  }
 0x1cc   :  { %673 = dma.done.wait [#allocation3], 64  }
 0x1cd   :  { %674 = vsyncadd [#allocation3], 4294967232 }
 0x1ce   :  { %527 = vsyncpa [#allocation3], 1 }

</bundles_post_ra>
